<compile_context>
chip_gen: v7x
topology: tpu7x:2x2x1
jax: 0.10.0
libtpu: 0.0.40
codegen_flags: <defaults>
</compile_context>

<pallas_src>
import functools

import jax
import jax.numpy as jnp
from jax.experimental import pallas as pl
from jax.experimental.pallas import tpu as pltpu

LN_EPS = 1e-5  # nn.LayerNorm default eps


def _plain_encoder_kernel(depth, *refs):
    """One batch-tile of the PlainEncoder forward pass.

    refs = (x, W1, [Whs], vecs, Wout, bout, out)
      x    : (BM, D)                 input batch tile (streamed)
      W1   : (D, H)                  first linear weight (x @ W1 layout)
      Whs  : (depth, H, H)           stacked hidden linear weights (if depth>0)
      vecs : (3*(depth+1), H)        rows [bias, gamma, beta] per pre-out block
      Wout : (H, Op), bout : (1, Op) final linear, lane-padded to Op
      out  : (BM, Op)
    """
    if depth > 0:
        x_ref, w1_ref, whs_ref, vecs_ref, wout_ref, bout_ref, o_ref = refs
    else:
        x_ref, w1_ref, vecs_ref, wout_ref, bout_ref, o_ref = refs
        whs_ref = None

    def block(h, layer):
        # Linear bias + LayerNorm + SiLU for pre-output block `layer` (f32 VPU math).
        b = vecs_ref[pl.ds(3 * layer + 0, 1), :]      # (1, H)
        gamma = vecs_ref[pl.ds(3 * layer + 1, 1), :]  # (1, H)
        beta = vecs_ref[pl.ds(3 * layer + 2, 1), :]   # (1, H)
        h = h + b
        # One-pass LayerNorm: mean and mean-of-squares together, gamma folded
        # into rstd so h is traversed once (halves the cross-lane reductions).
        mu = jnp.mean(h, axis=-1, keepdims=True)
        msq = jnp.mean(h * h, axis=-1, keepdims=True)
        var = jnp.maximum(msq - mu * mu, 0.0)
        scale = jax.lax.rsqrt(var + LN_EPS) * gamma
        hn = h * scale + (beta - mu * scale)
        # SiLU.  Dropout reproduced in eval mode (identity).
        # TODO(synk): train-mode stochastic Dropout would need a
        # pltpu.prng_seed/prng_random_bits mask keyed per batch tile.
        return hn * jax.nn.sigmoid(hn)

    # Matmul operands cast to the weight dtype (bf16 weights -> native MXU
    # rate on v6e/v7x); accumulation always f32 via preferred_element_type.
    h = jnp.dot(x_ref[...].astype(w1_ref.dtype), w1_ref[...],
                preferred_element_type=jnp.float32)
    h = block(h, 0)
    for l in range(depth):  # static unroll, depth is a Python int
        h = jnp.dot(h.astype(whs_ref.dtype), whs_ref[l],
                    preferred_element_type=jnp.float32)
        h = block(h, l + 1)

    y = jnp.dot(h.astype(wout_ref.dtype), wout_ref[...],
                preferred_element_type=jnp.float32) + bout_ref[...]
    o_ref[...] = y.astype(o_ref.dtype)


def _round_up(a, m):
    return (a + m - 1) // m * m


def _vmem_limit_bytes():
    """Generation-aware scoped-VMEM budget: ~3/4 of physical, capped at 100 MiB.

    v5e/v6e (128 MiB physical) -> 96 MiB; v7x (64 MiB) -> 48 MiB.
    """
    try:
        cap = int(pltpu.get_tpu_info().vmem_capacity_bytes)
    except Exception:  # conservative default that still fits v7x
        cap = 64 * 1024 * 1024
    return min(100 * 1024 * 1024, (cap * 3) // 4)


def plain_encoder_forward(x, params, *, block_rows=512):
    """Runs the PlainEncoder forward pass as one pallas_call.

    params (see build_params):
      W1   : (D, H)            first linear weight, x @ W1 layout (f32 or bf16)
      Whs  : (depth, H, H)     stacked hidden weights, or None if depth == 0
      vecs : (3*(depth+1), H)  packed f32 [bias, gamma, beta] rows per block
      Wout : (H, Op)           final weight, zero-padded to Op = round_up(O, 128)
      bout : (1, Op)           final bias, zero-padded
      out_dim : O              true output width (host slices y[:, :O])
    """
    B, D = x.shape
    W1, vecs = params["W1"], params["vecs"]
    Wout, bout = params["Wout"], params["bout"]
    Whs = params.get("Whs")
    O = int(params["out_dim"])
    depth = 0 if Whs is None else int(Whs.shape[0])
    H = W1.shape[1]
    Op = Wout.shape[1]  # lane-dense (128-multiple) output width

    # Batch tile: a single tile if the batch fits, else `block_rows` (default
    # 512 -> a multiple of both the 256-wide v6e/v7x and 128-wide v5e MXU).
    # No host-side pad of x: the ragged tail block is handled by Pallas.
    if B <= block_rows:
        BM = _round_up(B, 8)
    else:
        BM = _round_up(block_rows, 8)
    grid = (pl.cdiv(B, BM),)

    out_shape = jax.ShapeDtypeStruct((B, Op), jnp.float32)

    # Advisory cost estimate so XLA schedules around this cheap custom call.
    flops = 2 * B * (D * H + depth * H * H + H * Op) + 10 * B * H * (depth + 1)
    transcendentals = B * H * (depth + 1)  # sigmoid inside SiLU
    operands = [x, W1, vecs, Wout, bout] + ([Whs] if depth > 0 else [])
    bytes_accessed = sum(int(a.size) * int(a.dtype.itemsize) for a in operands) + 4 * B * Op

    kernel = functools.partial(_plain_encoder_kernel, depth)

    def call(single_buffer_weights):
        if single_buffer_weights:
            # Constant-index blocks are fetched exactly once: single-buffer
            # them so the resident weight slab occupies VMEM once instead of
            # the default two copies (matters most on v7x's 64 MiB VMEM).
            wspec = functools.partial(pl.BlockSpec, pipeline_mode=pl.Buffered(1))
        else:
            wspec = pl.BlockSpec

        in_specs = [
            pl.BlockSpec((BM, D), lambda i: (i, 0)),   # x: streamed, double-buffered
            wspec((D, H), lambda i: (0, 0)),           # W1: VMEM-resident
        ]
        inputs = [x, W1]
        if depth > 0:
            # TODO(synk): if depth*H*H ever exceeds the VMEM budget (large
            # production H on v7x), stream Whs per layer with an extra grid
            # axis / emit_pipeline instead of keeping the full stack resident.
            in_specs.append(wspec((depth, H, H), lambda i: (0, 0, 0)))
            inputs.append(Whs)
        in_specs += [
            wspec((3 * (depth + 1), H), lambda i: (0, 0)),  # packed bias/gamma/beta
            wspec((H, Op), lambda i: (0, 0)),
            wspec((1, Op), lambda i: (0, 0)),
        ]
        inputs += [vecs, Wout, bout]

        return pl.pallas_call(
            kernel,
            out_shape=out_shape,
            grid=grid,
            in_specs=in_specs,
            out_specs=pl.BlockSpec((BM, Op), lambda i: (i, 0)),  # lane-dense stores
            compiler_params=pltpu.CompilerParams(
                dimension_semantics=("parallel",),
                vmem_limit_bytes=_vmem_limit_bytes(),
            ),
            cost_estimate=pl.CostEstimate(
                flops=int(flops),
                transcendentals=int(transcendentals),
                bytes_accessed=int(bytes_accessed),
            ),
        )(*inputs)

    try:
        y = call(True)
    except Exception:
        # Fallback for jax builds that reject pipeline_mode=pl.Buffered(1) on
        # pallas_call BlockSpecs; identical math with default double-buffering.
        y = call(False)

    return y[:, :O]


def reference_forward(x, params):
    """Pure-JAX f32 reference (eval-mode Dropout == identity), highest-precision dots."""
    dot_hi = functools.partial(jnp.dot, precision=jax.lax.Precision.HIGHEST)
    W1 = params["W1"].astype(jnp.float32)
    vecs = params["vecs"]
    Wout = params["Wout"].astype(jnp.float32)
    bout = params["bout"]
    Whs = params.get("Whs")
    O = int(params["out_dim"])
    depth = 0 if Whs is None else int(Whs.shape[0])

    def block(h, l):
        b, g, be = vecs[3 * l], vecs[3 * l + 1], vecs[3 * l + 2]
        h = h + b
        mu = h.mean(-1, keepdims=True)
        var = ((h - mu) ** 2).mean(-1, keepdims=True)
        hn = (h - mu) / jnp.sqrt(var + LN_EPS) * g + be
        return hn * jax.nn.sigmoid(hn)

    h = block(dot_hi(x, W1), 0)
    for l in range(depth):
        h = block(dot_hi(h, Whs[l].astype(jnp.float32)), l + 1)
    return (dot_hi(h, Wout) + bout)[:, :O]


def _init_linear(key, din, dout):
    k1, k2 = jax.random.split(key)
    lim = 1.0 / float(din) ** 0.5
    W = jax.random.uniform(k1, (din, dout), jnp.float32, -lim, lim)
    b = jax.random.uniform(k2, (dout,), jnp.float32, -lim, lim)
    return W, b


def build_params(key, input_dim, hidden_dim, output_dim, depth, *,
                 matmul_dtype=jnp.float32):
    """Packs the PlainEncoder parameters into few, DMA-friendly slabs."""
    keys = iter(jax.random.split(key, depth + 2))
    W1, b1 = _init_linear(next(keys), input_dim, hidden_dim)
    vec_rows = [b1, jnp.ones((hidden_dim,), jnp.float32),
                jnp.zeros((hidden_dim,), jnp.float32)]
    whs = []
    for _ in range(depth):
        Wh, bh = _init_linear(next(keys), hidden_dim, hidden_dim)
        whs.append(Wh)
        vec_rows += [bh, jnp.ones((hidden_dim,), jnp.float32),
                     jnp.zeros((hidden_dim,), jnp.float32)]
    Wout, bout = _init_linear(next(keys), hidden_dim, output_dim)

    # Lane-dense output: zero-pad the final weight/bias so the kernel's output
    # block last dim is a multiple of 128 (unmasked vst instead of vst.msk).
    Op = _round_up(output_dim, 128)
    Wout = jnp.pad(Wout, ((0, 0), (0, Op - output_dim)))
    bout = jnp.pad(bout.reshape(1, output_dim), ((0, 0), (0, Op - output_dim)))

    return dict(
        W1=W1.astype(matmul_dtype),
        Whs=jnp.stack(whs, 0).astype(matmul_dtype) if depth > 0 else None,
        vecs=jnp.stack(vec_rows, 0),          # (3*(depth+1), H), f32
        Wout=Wout.astype(matmul_dtype),
        bout=bout,                            # f32, added post-accumulation
        out_dim=output_dim,
    )


if __name__ == "__main__":
    key = jax.random.PRNGKey(0)
    k_param, k_x1, k_x2 = jax.random.split(key, 3)

    input_dim, hidden_dim, output_dim, depth = 48, 32, 16, 1

    params = build_params(k_param, input_dim, hidden_dim, output_dim, depth)

    # Tolerance note: 1e-2 decisively catches any vecs-slab packing / indexing
    # bug (those produce O(0.1-1) errors) while leaving headroom for the MXU's
    # default reduced-precision f32 passes, which are outside this kernel's
    # control; the bf16-weight case below uses 5e-2.

    # Case 1: batch a multiple of the tile -> 2-step parallel grid.
    B1 = 16
    x1 = jax.random.normal(k_x1, (B1, input_dim), jnp.float32)
    out1 = jax.block_until_ready(plain_encoder_forward(x1, params, block_rows=8))
    ref1 = reference_forward(x1, params)
    assert out1.shape == (B1, output_dim)
    assert bool(jnp.allclose(out1, ref1, atol=1e-2, rtol=1e-2)), \
        float(jnp.max(jnp.abs(out1 - ref1)))

    # Case 2: ragged batch -> Pallas masks the tail block (no host-side pad of x).
    B2 = 5
    x2 = jax.random.normal(k_x2, (B2, input_dim), jnp.float32)
    out2 = jax.block_until_ready(plain_encoder_forward(x2, params, block_rows=8))
    ref2 = reference_forward(x2, params)
    assert out2.shape == (B2, output_dim)
    assert bool(jnp.allclose(out2, ref2, atol=1e-2, rtol=1e-2)), \
        float(jnp.max(jnp.abs(out2 - ref2)))

    # Case 3: bf16 matmul operands (native MXU rate on v6e/v7x) with f32
    # accumulation and f32 LayerNorm/SiLU; same underlying weights as case 1.
    params_bf16 = build_params(k_param, input_dim, hidden_dim, output_dim, depth,
                               matmul_dtype=jnp.bfloat16)
    out3 = jax.block_until_ready(plain_encoder_forward(x1, params_bf16, block_rows=8))
    assert out3.shape == (B1, output_dim)
    assert bool(jnp.allclose(out3, ref1, atol=5e-2, rtol=5e-2)), \
        float(jnp.max(jnp.abs(out3 - ref1)))

    print("KERNEL_OK")
</pallas_src>

<mosaic_0001>
module attributes {stable_mosaic.version = 11 : i64} {
  func.func @_plain_encoder_kernel(%arg0: i32, %arg1: memref<8x48xf32, #tpu.memory_space<vmem>>, %arg2: memref<48x32xf32, #tpu.memory_space<vmem>>, %arg3: memref<1x32x32xf32, #tpu.memory_space<vmem>>, %arg4: memref<6x32xf32, #tpu.memory_space<vmem>>, %arg5: memref<32x128xf32, #tpu.memory_space<vmem>>, %arg6: memref<1x128xf32, #tpu.memory_space<vmem>>, %arg7: memref<8x128xf32, #tpu.memory_space<vmem>>) attributes {dimension_semantics = [#tpu.dimension_semantics<parallel>], iteration_bounds = array<i64: 2>, scalar_prefetch = 0 : i64, scratch_operands = 0 : i64, tpu.core_type = #tpu.core_type<tc>, window_params = [{transform_indices = @transform_0, window_bounds = array<i64: 8, 48>}, {pipeline_mode = #tpu.pipeline_mode<synchronous>, transform_indices = @transform_1, window_bounds = array<i64: 48, 32>}, {pipeline_mode = #tpu.pipeline_mode<synchronous>, transform_indices = @transform_2, window_bounds = array<i64: 1, 32, 32>}, {pipeline_mode = #tpu.pipeline_mode<synchronous>, transform_indices = @transform_3, window_bounds = array<i64: 6, 32>}, {pipeline_mode = #tpu.pipeline_mode<synchronous>, transform_indices = @transform_4, window_bounds = array<i64: 32, 128>}, {pipeline_mode = #tpu.pipeline_mode<synchronous>, transform_indices = @transform_5, window_bounds = array<i64: 1, 128>}, {transform_indices = @transform_6, window_bounds = array<i64: 8, 128>}]} {
    %c0 = arith.constant 0 : index
    %c0_0 = arith.constant 0 : index
    %0 = vector.load %arg1[%c0, %c0_0] : memref<8x48xf32, #tpu.memory_space<vmem>>, vector<8x48xf32>
    %c0_1 = arith.constant 0 : index
    %c0_2 = arith.constant 0 : index
    %1 = vector.load %arg2[%c0_1, %c0_2] : memref<48x32xf32, #tpu.memory_space<vmem>>, vector<48x32xf32>
    %cst = arith.constant dense<0.000000e+00> : vector<8x32xf32>
    %2 = tpu.matmul %0, %1, %cst {dimension_numbers = #tpu.dot_dimension_numbers<[1], [0], [0], [1], [0, 0, 1, 1], [], []>} : vector<8x48xf32>, vector<48x32xf32>, vector<8x32xf32> -> vector<8x32xf32>
    %c0_3 = arith.constant 0 : index
    %c0_4 = arith.constant 0 : index
    %3 = vector.load %arg4[%c0_3, %c0_4] : memref<6x32xf32, #tpu.memory_space<vmem>>, vector<1x32xf32>
    %c1 = arith.constant 1 : index
    %c0_5 = arith.constant 0 : index
    %4 = vector.load %arg4[%c1, %c0_5] : memref<6x32xf32, #tpu.memory_space<vmem>>, vector<1x32xf32>
    %c2 = arith.constant 2 : index
    %c0_6 = arith.constant 0 : index
    %5 = vector.load %arg4[%c2, %c0_6] : memref<6x32xf32, #tpu.memory_space<vmem>>, vector<1x32xf32>
    %6 = vector.broadcast %3 : vector<1x32xf32> to vector<8x32xf32>
    %7 = arith.addf %2, %6 : vector<8x32xf32>
    %cst_7 = arith.constant dense<0.000000e+00> : vector<8xf32>
    %8 = vector.multi_reduction <add>, %7, %cst_7 [1] : vector<8x32xf32> to vector<8xf32>
    %9 = vector.shape_cast %8 : vector<8xf32> to vector<8x1xf32>
    %cst_8 = arith.constant 3.200000e+01 : f32
    %10 = vector.broadcast %cst_8 : f32 to vector<8x1xf32>
    %11 = arith.divf %9, %10 : vector<8x1xf32>
    %12 = arith.mulf %7, %7 : vector<8x32xf32>
    %cst_9 = arith.constant dense<0.000000e+00> : vector<8xf32>
    %13 = vector.multi_reduction <add>, %12, %cst_9 [1] : vector<8x32xf32> to vector<8xf32>
    %14 = vector.shape_cast %13 : vector<8xf32> to vector<8x1xf32>
    %cst_10 = arith.constant 3.200000e+01 : f32
    %15 = vector.broadcast %cst_10 : f32 to vector<8x1xf32>
    %16 = arith.divf %14, %15 : vector<8x1xf32>
    %17 = arith.mulf %11, %11 : vector<8x1xf32>
    %18 = arith.subf %16, %17 : vector<8x1xf32>
    %cst_11 = arith.constant 0.000000e+00 : f32
    %19 = vector.broadcast %cst_11 : f32 to vector<8x1xf32>
    %20 = arith.maximumf %18, %19 : vector<8x1xf32>
    %cst_12 = arith.constant 9.99999974E-6 : f32
    %21 = vector.broadcast %cst_12 : f32 to vector<8x1xf32>
    %22 = arith.addf %20, %21 : vector<8x1xf32>
    %23 = math.rsqrt %22 : vector<8x1xf32>
    %24 = vector.broadcast %23 : vector<8x1xf32> to vector<8x32xf32>
    %25 = vector.broadcast %4 : vector<1x32xf32> to vector<8x32xf32>
    %26 = arith.mulf %24, %25 : vector<8x32xf32>
    %27 = arith.mulf %7, %26 : vector<8x32xf32>
    %28 = vector.broadcast %11 : vector<8x1xf32> to vector<8x32xf32>
    %29 = arith.mulf %28, %26 : vector<8x32xf32>
    %30 = vector.broadcast %5 : vector<1x32xf32> to vector<8x32xf32>
    %31 = arith.subf %30, %29 : vector<8x32xf32>
    %32 = arith.addf %27, %31 : vector<8x32xf32>
    %33 = arith.negf %32 : vector<8x32xf32>
    %34 = math.exp %33 : vector<8x32xf32>
    %cst_13 = arith.constant 1.000000e+00 : f32
    %35 = vector.broadcast %cst_13 : f32 to vector<8x32xf32>
    %36 = arith.addf %35, %34 : vector<8x32xf32>
    %37 = arith.divf %35, %36 : vector<8x32xf32>
    %38 = arith.mulf %32, %37 : vector<8x32xf32>
    %c0_14 = arith.constant 0 : index
    %c0_15 = arith.constant 0 : index
    %c0_16 = arith.constant 0 : index
    %39 = vector.load %arg3[%c0_14, %c0_15, %c0_16] : memref<1x32x32xf32, #tpu.memory_space<vmem>>, vector<1x32x32xf32>
    %40 = vector.shape_cast %39 : vector<1x32x32xf32> to vector<32x32xf32>
    %cst_17 = arith.constant dense<0.000000e+00> : vector<8x32xf32>
    %41 = tpu.matmul %38, %40, %cst_17 {dimension_numbers = #tpu.dot_dimension_numbers<[1], [0], [0], [1], [0, 0, 1, 1], [], []>} : vector<8x32xf32>, vector<32x32xf32>, vector<8x32xf32> -> vector<8x32xf32>
    %c3 = arith.constant 3 : index
    %c0_18 = arith.constant 0 : index
    %42 = vector.load %arg4[%c3, %c0_18] : memref<6x32xf32, #tpu.memory_space<vmem>>, vector<1x32xf32>
    %c4 = arith.constant 4 : index
    %c0_19 = arith.constant 0 : index
    %43 = vector.load %arg4[%c4, %c0_19] : memref<6x32xf32, #tpu.memory_space<vmem>>, vector<1x32xf32>
    %c5 = arith.constant 5 : index
    %c0_20 = arith.constant 0 : index
    %44 = vector.load %arg4[%c5, %c0_20] : memref<6x32xf32, #tpu.memory_space<vmem>>, vector<1x32xf32>
    %45 = vector.broadcast %42 : vector<1x32xf32> to vector<8x32xf32>
    %46 = arith.addf %41, %45 : vector<8x32xf32>
    %cst_21 = arith.constant dense<0.000000e+00> : vector<8xf32>
    %47 = vector.multi_reduction <add>, %46, %cst_21 [1] : vector<8x32xf32> to vector<8xf32>
    %48 = vector.shape_cast %47 : vector<8xf32> to vector<8x1xf32>
    %cst_22 = arith.constant 3.200000e+01 : f32
    %49 = vector.broadcast %cst_22 : f32 to vector<8x1xf32>
    %50 = arith.divf %48, %49 : vector<8x1xf32>
    %51 = arith.mulf %46, %46 : vector<8x32xf32>
    %cst_23 = arith.constant dense<0.000000e+00> : vector<8xf32>
    %52 = vector.multi_reduction <add>, %51, %cst_23 [1] : vector<8x32xf32> to vector<8xf32>
    %53 = vector.shape_cast %52 : vector<8xf32> to vector<8x1xf32>
    %cst_24 = arith.constant 3.200000e+01 : f32
    %54 = vector.broadcast %cst_24 : f32 to vector<8x1xf32>
    %55 = arith.divf %53, %54 : vector<8x1xf32>
    %56 = arith.mulf %50, %50 : vector<8x1xf32>
    %57 = arith.subf %55, %56 : vector<8x1xf32>
    %cst_25 = arith.constant 0.000000e+00 : f32
    %58 = vector.broadcast %cst_25 : f32 to vector<8x1xf32>
    %59 = arith.maximumf %57, %58 : vector<8x1xf32>
    %cst_26 = arith.constant 9.99999974E-6 : f32
    %60 = vector.broadcast %cst_26 : f32 to vector<8x1xf32>
    %61 = arith.addf %59, %60 : vector<8x1xf32>
    %62 = math.rsqrt %61 : vector<8x1xf32>
    %63 = vector.broadcast %62 : vector<8x1xf32> to vector<8x32xf32>
    %64 = vector.broadcast %43 : vector<1x32xf32> to vector<8x32xf32>
    %65 = arith.mulf %63, %64 : vector<8x32xf32>
    %66 = arith.mulf %46, %65 : vector<8x32xf32>
    %67 = vector.broadcast %50 : vector<8x1xf32> to vector<8x32xf32>
    %68 = arith.mulf %67, %65 : vector<8x32xf32>
    %69 = vector.broadcast %44 : vector<1x32xf32> to vector<8x32xf32>
    %70 = arith.subf %69, %68 : vector<8x32xf32>
    %71 = arith.addf %66, %70 : vector<8x32xf32>
    %72 = arith.negf %71 : vector<8x32xf32>
    %73 = math.exp %72 : vector<8x32xf32>
    %cst_27 = arith.constant 1.000000e+00 : f32
    %74 = vector.broadcast %cst_27 : f32 to vector<8x32xf32>
    %75 = arith.addf %74, %73 : vector<8x32xf32>
    %76 = arith.divf %74, %75 : vector<8x32xf32>
    %77 = arith.mulf %71, %76 : vector<8x32xf32>
    %c0_28 = arith.constant 0 : index
    %c0_29 = arith.constant 0 : index
    %78 = vector.load %arg5[%c0_28, %c0_29] : memref<32x128xf32, #tpu.memory_space<vmem>>, vector<32x128xf32>
    %cst_30 = arith.constant dense<0.000000e+00> : vector<8x128xf32>
    %79 = tpu.matmul %77, %78, %cst_30 {dimension_numbers = #tpu.dot_dimension_numbers<[1], [0], [0], [1], [0, 0, 1, 1], [], []>} : vector<8x32xf32>, vector<32x128xf32>, vector<8x128xf32> -> vector<8x128xf32>
    %c0_31 = arith.constant 0 : index
    %c0_32 = arith.constant 0 : index
    %80 = vector.load %arg6[%c0_31, %c0_32] : memref<1x128xf32, #tpu.memory_space<vmem>>, vector<1x128xf32>
    %81 = vector.broadcast %80 : vector<1x128xf32> to vector<8x128xf32>
    %82 = arith.addf %79, %81 : vector<8x128xf32>
    %c0_33 = arith.constant 0 : index
    %c0_34 = arith.constant 0 : index
    %83 = vector.load %arg7[%c0_33, %c0_34] : memref<8x128xf32, #tpu.memory_space<vmem>>, vector<8x128xf32>
    tpu.vector_store %arg7[%c0_33, %c0_34], %82 {strides = array<i32>} : memref<8x128xf32, #tpu.memory_space<vmem>>, vector<8x128xf32>,
    return
  }
  func.func @transform_0(%arg0: i32) -> (i32, i32) {
    %c0_i32 = arith.constant 0 : i32
    %c0_i32_0 = arith.constant 0 : i32
    return %arg0, %c0_i32 : i32, i32
  }
  func.func @transform_1(%arg0: i32) -> (i32, i32) {
    %c0_i32 = arith.constant 0 : i32
    %c0_i32_0 = arith.constant 0 : i32
    %c0_i32_1 = arith.constant 0 : i32
    return %c0_i32, %c0_i32_0 : i32, i32
  }
  func.func @transform_2(%arg0: i32) -> (i32, i32, i32) {
    %c0_i32 = arith.constant 0 : i32
    %c0_i32_0 = arith.constant 0 : i32
    %c0_i32_1 = arith.constant 0 : i32
    %c0_i32_2 = arith.constant 0 : i32
    return %c0_i32, %c0_i32_0, %c0_i32_1 : i32, i32, i32
  }
  func.func @transform_3(%arg0: i32) -> (i32, i32) {
    %c0_i32 = arith.constant 0 : i32
    %c0_i32_0 = arith.constant 0 : i32
    %c0_i32_1 = arith.constant 0 : i32
    return %c0_i32, %c0_i32_0 : i32, i32
  }
  func.func @transform_4(%arg0: i32) -> (i32, i32) {
    %c0_i32 = arith.constant 0 : i32
    %c0_i32_0 = arith.constant 0 : i32
    %c0_i32_1 = arith.constant 0 : i32
    return %c0_i32, %c0_i32_0 : i32, i32
  }
  func.func @transform_5(%arg0: i32) -> (i32, i32) {
    %c0_i32 = arith.constant 0 : i32
    %c0_i32_0 = arith.constant 0 : i32
    %c0_i32_1 = arith.constant 0 : i32
    return %c0_i32, %c0_i32_0 : i32, i32
  }
  func.func @transform_6(%arg0: i32) -> (i32, i32) {
    %c0_i32 = arith.constant 0 : i32
    %c0_i32_0 = arith.constant 0 : i32
    return %arg0, %c0_i32 : i32, i32
  }
}

module attributes {stable_mosaic.version = 11 : i64} {
  func.func @_plain_encoder_kernel(%arg0: i32, %arg1: memref<8x48xf32, #tpu.memory_space<vmem>>, %arg2: memref<48x32xf32, #tpu.memory_space<vmem>>, %arg3: memref<1x32x32xf32, #tpu.memory_space<vmem>>, %arg4: memref<6x32xf32, #tpu.memory_space<vmem>>, %arg5: memref<32x128xf32, #tpu.memory_space<vmem>>, %arg6: memref<1x128xf32, #tpu.memory_space<vmem>>, %arg7: memref<8x128xf32, #tpu.memory_space<vmem>>) attributes {dimension_semantics = [#tpu.dimension_semantics<parallel>], iteration_bounds = array<i64: 2>, scalar_prefetch = 0 : i64, scratch_operands = 0 : i64, tpu.core_type = #tpu.core_type<tc>, window_params = [{transform_indices = @transform_0, window_bounds = array<i64: 8, 48>}, {pipeline_mode = #tpu.pipeline_mode<synchronous>, transform_indices = @transform_1, window_bounds = array<i64: 48, 32>}, {pipeline_mode = #tpu.pipeline_mode<synchronous>, transform_indices = @transform_2, window_bounds = array<i64: 1, 32, 32>}, {pipeline_mode = #tpu.pipeline_mode<synchronous>, transform_indices = @transform_3, window_bounds = array<i64: 6, 32>}, {pipeline_mode = #tpu.pipeline_mode<synchronous>, transform_indices = @transform_4, window_bounds = array<i64: 32, 128>}, {pipeline_mode = #tpu.pipeline_mode<synchronous>, transform_indices = @transform_5, window_bounds = array<i64: 1, 128>}, {transform_indices = @transform_6, window_bounds = array<i64: 8, 128>}]} {
    %c0 = arith.constant 0 : index
    %c0_0 = arith.constant 0 : index
    %0 = vector.load %arg1[%c0, %c0_0] : memref<8x48xf32, #tpu.memory_space<vmem>>, vector<8x48xf32>
    %c0_1 = arith.constant 0 : index
    %c0_2 = arith.constant 0 : index
    %1 = vector.load %arg2[%c0_1, %c0_2] : memref<48x32xf32, #tpu.memory_space<vmem>>, vector<48x32xf32>
    %cst = arith.constant dense<0.000000e+00> : vector<8x32xf32>
    %2 = tpu.matmul %0, %1, %cst {dimension_numbers = #tpu.dot_dimension_numbers<[1], [0], [0], [1], [0, 0, 1, 1], [], []>} : vector<8x48xf32>, vector<48x32xf32>, vector<8x32xf32> -> vector<8x32xf32>
    %c0_3 = arith.constant 0 : index
    %c0_4 = arith.constant 0 : index
    %3 = vector.load %arg4[%c0_3, %c0_4] : memref<6x32xf32, #tpu.memory_space<vmem>>, vector<1x32xf32>
    %c1 = arith.constant 1 : index
    %c0_5 = arith.constant 0 : index
    %4 = vector.load %arg4[%c1, %c0_5] : memref<6x32xf32, #tpu.memory_space<vmem>>, vector<1x32xf32>
    %c2 = arith.constant 2 : index
    %c0_6 = arith.constant 0 : index
    %5 = vector.load %arg4[%c2, %c0_6] : memref<6x32xf32, #tpu.memory_space<vmem>>, vector<1x32xf32>
    %6 = vector.broadcast %3 : vector<1x32xf32> to vector<8x32xf32>
    %7 = arith.addf %2, %6 : vector<8x32xf32>
    %cst_7 = arith.constant dense<0.000000e+00> : vector<8xf32>
    %8 = vector.multi_reduction <add>, %7, %cst_7 [1] : vector<8x32xf32> to vector<8xf32>
    %9 = vector.shape_cast %8 : vector<8xf32> to vector<8x1xf32>
    %cst_8 = arith.constant 3.200000e+01 : f32
    %10 = vector.broadcast %cst_8 : f32 to vector<8x1xf32>
    %11 = arith.divf %9, %10 : vector<8x1xf32>
    %12 = arith.mulf %7, %7 : vector<8x32xf32>
    %cst_9 = arith.constant dense<0.000000e+00> : vector<8xf32>
    %13 = vector.multi_reduction <add>, %12, %cst_9 [1] : vector<8x32xf32> to vector<8xf32>
    %14 = vector.shape_cast %13 : vector<8xf32> to vector<8x1xf32>
    %cst_10 = arith.constant 3.200000e+01 : f32
    %15 = vector.broadcast %cst_10 : f32 to vector<8x1xf32>
    %16 = arith.divf %14, %15 : vector<8x1xf32>
    %17 = arith.mulf %11, %11 : vector<8x1xf32>
    %18 = arith.subf %16, %17 : vector<8x1xf32>
    %cst_11 = arith.constant 0.000000e+00 : f32
    %19 = vector.broadcast %cst_11 : f32 to vector<8x1xf32>
    %20 = arith.maximumf %18, %19 : vector<8x1xf32>
    %cst_12 = arith.constant 9.99999974E-6 : f32
    %21 = vector.broadcast %cst_12 : f32 to vector<8x1xf32>
    %22 = arith.addf %20, %21 : vector<8x1xf32>
    %23 = math.rsqrt %22 : vector<8x1xf32>
    %24 = vector.broadcast %23 : vector<8x1xf32> to vector<8x32xf32>
    %25 = vector.broadcast %4 : vector<1x32xf32> to vector<8x32xf32>
    %26 = arith.mulf %24, %25 : vector<8x32xf32>
    %27 = arith.mulf %7, %26 : vector<8x32xf32>
    %28 = vector.broadcast %11 : vector<8x1xf32> to vector<8x32xf32>
    %29 = arith.mulf %28, %26 : vector<8x32xf32>
    %30 = vector.broadcast %5 : vector<1x32xf32> to vector<8x32xf32>
    %31 = arith.subf %30, %29 : vector<8x32xf32>
    %32 = arith.addf %27, %31 : vector<8x32xf32>
    %33 = arith.negf %32 : vector<8x32xf32>
    %34 = math.exp %33 : vector<8x32xf32>
    %cst_13 = arith.constant 1.000000e+00 : f32
    %35 = vector.broadcast %cst_13 : f32 to vector<8x32xf32>
    %36 = arith.addf %35, %34 : vector<8x32xf32>
    %37 = arith.divf %35, %36 : vector<8x32xf32>
    %38 = arith.mulf %32, %37 : vector<8x32xf32>
    %c0_14 = arith.constant 0 : index
    %c0_15 = arith.constant 0 : index
    %c0_16 = arith.constant 0 : index
    %39 = vector.load %arg3[%c0_14, %c0_15, %c0_16] : memref<1x32x32xf32, #tpu.memory_space<vmem>>, vector<1x32x32xf32>
    %40 = vector.shape_cast %39 : vector<1x32x32xf32> to vector<32x32xf32>
    %cst_17 = arith.constant dense<0.000000e+00> : vector<8x32xf32>
    %41 = tpu.matmul %38, %40, %cst_17 {dimension_numbers = #tpu.dot_dimension_numbers<[1], [0], [0], [1], [0, 0, 1, 1], [], []>} : vector<8x32xf32>, vector<32x32xf32>, vector<8x32xf32> -> vector<8x32xf32>
    %c3 = arith.constant 3 : index
    %c0_18 = arith.constant 0 : index
    %42 = vector.load %arg4[%c3, %c0_18] : memref<6x32xf32, #tpu.memory_space<vmem>>, vector<1x32xf32>
    %c4 = arith.constant 4 : index
    %c0_19 = arith.constant 0 : index
    %43 = vector.load %arg4[%c4, %c0_19] : memref<6x32xf32, #tpu.memory_space<vmem>>, vector<1x32xf32>
    %c5 = arith.constant 5 : index
    %c0_20 = arith.constant 0 : index
    %44 = vector.load %arg4[%c5, %c0_20] : memref<6x32xf32, #tpu.memory_space<vmem>>, vector<1x32xf32>
    %45 = vector.broadcast %42 : vector<1x32xf32> to vector<8x32xf32>
    %46 = arith.addf %41, %45 : vector<8x32xf32>
    %cst_21 = arith.constant dense<0.000000e+00> : vector<8xf32>
    %47 = vector.multi_reduction <add>, %46, %cst_21 [1] : vector<8x32xf32> to vector<8xf32>
    %48 = vector.shape_cast %47 : vector<8xf32> to vector<8x1xf32>
    %cst_22 = arith.constant 3.200000e+01 : f32
    %49 = vector.broadcast %cst_22 : f32 to vector<8x1xf32>
    %50 = arith.divf %48, %49 : vector<8x1xf32>
    %51 = arith.mulf %46, %46 : vector<8x32xf32>
    %cst_23 = arith.constant dense<0.000000e+00> : vector<8xf32>
    %52 = vector.multi_reduction <add>, %51, %cst_23 [1] : vector<8x32xf32> to vector<8xf32>
    %53 = vector.shape_cast %52 : vector<8xf32> to vector<8x1xf32>
    %cst_24 = arith.constant 3.200000e+01 : f32
    %54 = vector.broadcast %cst_24 : f32 to vector<8x1xf32>
    %55 = arith.divf %53, %54 : vector<8x1xf32>
    %56 = arith.mulf %50, %50 : vector<8x1xf32>
    %57 = arith.subf %55, %56 : vector<8x1xf32>
    %cst_25 = arith.constant 0.000000e+00 : f32
    %58 = vector.broadcast %cst_25 : f32 to vector<8x1xf32>
    %59 = arith.maximumf %57, %58 : vector<8x1xf32>
    %cst_26 = arith.constant 9.99999974E-6 : f32
    %60 = vector.broadcast %cst_26 : f32 to vector<8x1xf32>
    %61 = arith.addf %59, %60 : vector<8x1xf32>
    %62 = math.rsqrt %61 : vector<8x1xf32>
    %63 = vector.broadcast %62 : vector<8x1xf32> to vector<8x32xf32>
    %64 = vector.broadcast %43 : vector<1x32xf32> to vector<8x32xf32>
    %65 = arith.mulf %63, %64 : vector<8x32xf32>
    %66 = arith.mulf %46, %65 : vector<8x32xf32>
    %67 = vector.broadcast %50 : vector<8x1xf32> to vector<8x32xf32>
    %68 = arith.mulf %67, %65 : vector<8x32xf32>
    %69 = vector.broadcast %44 : vector<1x32xf32> to vector<8x32xf32>
    %70 = arith.subf %69, %68 : vector<8x32xf32>
    %71 = arith.addf %66, %70 : vector<8x32xf32>
    %72 = arith.negf %71 : vector<8x32xf32>
    %73 = math.exp %72 : vector<8x32xf32>
    %cst_27 = arith.constant 1.000000e+00 : f32
    %74 = vector.broadcast %cst_27 : f32 to vector<8x32xf32>
    %75 = arith.addf %74, %73 : vector<8x32xf32>
    %76 = arith.divf %74, %75 : vector<8x32xf32>
    %77 = arith.mulf %71, %76 : vector<8x32xf32>
    %c0_28 = arith.constant 0 : index
    %c0_29 = arith.constant 0 : index
    %78 = vector.load %arg5[%c0_28, %c0_29] : memref<32x128xf32, #tpu.memory_space<vmem>>, vector<32x128xf32>
    %cst_30 = arith.constant dense<0.000000e+00> : vector<8x128xf32>
    %79 = tpu.matmul %77, %78, %cst_30 {dimension_numbers = #tpu.dot_dimension_numbers<[1], [0], [0], [1], [0, 0, 1, 1], [], []>} : vector<8x32xf32>, vector<32x128xf32>, vector<8x128xf32> -> vector<8x128xf32>
    %c0_31 = arith.constant 0 : index
    %c0_32 = arith.constant 0 : index
    %80 = vector.load %arg6[%c0_31, %c0_32] : memref<1x128xf32, #tpu.memory_space<vmem>>, vector<1x128xf32>
    %81 = vector.broadcast %80 : vector<1x128xf32> to vector<8x128xf32>
    %82 = arith.addf %79, %81 : vector<8x128xf32>
    %c0_33 = arith.constant 0 : index
    %c0_34 = arith.constant 0 : index
    %83 = vector.load %arg7[%c0_33, %c0_34] : memref<8x128xf32, #tpu.memory_space<vmem>>, vector<8x128xf32>
    tpu.vector_store %arg7[%c0_33, %c0_34], %82 {strides = array<i32>} : memref<8x128xf32, #tpu.memory_space<vmem>>, vector<8x128xf32>,
    return
  }
  func.func @transform_0(%arg0: i32) -> (i32, i32) {
    %c0_i32 = arith.constant 0 : i32
    %c0_i32_0 = arith.constant 0 : i32
    return %arg0, %c0_i32 : i32, i32
  }
  func.func @transform_1(%arg0: i32) -> (i32, i32) {
    %c0_i32 = arith.constant 0 : i32
    %c0_i32_0 = arith.constant 0 : i32
    %c0_i32_1 = arith.constant 0 : i32
    return %c0_i32, %c0_i32_0 : i32, i32
  }
  func.func @transform_2(%arg0: i32) -> (i32, i32, i32) {
    %c0_i32 = arith.constant 0 : i32
    %c0_i32_0 = arith.constant 0 : i32
    %c0_i32_1 = arith.constant 0 : i32
    %c0_i32_2 = arith.constant 0 : i32
    return %c0_i32, %c0_i32_0, %c0_i32_1 : i32, i32, i32
  }
  func.func @transform_3(%arg0: i32) -> (i32, i32) {
    %c0_i32 = arith.constant 0 : i32
    %c0_i32_0 = arith.constant 0 : i32
    %c0_i32_1 = arith.constant 0 : i32
    return %c0_i32, %c0_i32_0 : i32, i32
  }
  func.func @transform_4(%arg0: i32) -> (i32, i32) {
    %c0_i32 = arith.constant 0 : i32
    %c0_i32_0 = arith.constant 0 : i32
    %c0_i32_1 = arith.constant 0 : i32
    return %c0_i32, %c0_i32_0 : i32, i32
  }
  func.func @transform_5(%arg0: i32) -> (i32, i32) {
    %c0_i32 = arith.constant 0 : i32
    %c0_i32_0 = arith.constant 0 : i32
    %c0_i32_1 = arith.constant 0 : i32
    return %c0_i32, %c0_i32_0 : i32, i32
  }
  func.func @transform_6(%arg0: i32) -> (i32, i32) {
    %c0_i32 = arith.constant 0 : i32
    %c0_i32_0 = arith.constant 0 : i32
    return %arg0, %c0_i32 : i32, i32
  }
}

</mosaic_0001>

<bundles_post_ra>
// kernel: tpu_custom_call.1
= control target key start
LH: loop header
LB: loop body
LE: loop exit
PB: predicated region body
PF: predicated region fallthrough
CT: control target
= control target key end

     0   :  { %11 = vsyncpa [#allocation3], 0  ;;  %s1083_s0 = inlined_call_operand.vmem [shape: f32[16,48], index: 0, kind: input, shape index: {}]   ;;  %s1084_s1 = inlined_call_operand.vmem [shape: f32[48,32], index: 1, kind: input, shape index: {}]   ;;  %s1085_s2 = inlined_call_operand.vmem [shape: f32[1,32,32], index: 2, kind: input, shape index: {}]   ;;  %s1086_s3 = inlined_call_operand.vmem [shape: f32[6,32], index: 3, kind: input, shape index: {}]   ;;  %s1087_s4 = inlined_call_operand.vmem [shape: f32[32,128], index: 4, kind: input, shape index: {}]   ;;  %s1088_s5 = inlined_call_operand.vmem [shape: f32[1,128], index: 5, kind: input, shape index: {}]   ;;  %s1089_s6 = inlined_call_operand.hbm [shape: f32[16,128], index: 6, kind: output, shape index: {}]  }
   0x1   :  { %13 = vsyncpa [#allocation3 + $0x1], 0  ;;  %s901_s21 = smov 0   ;;  %s903_s22 = smov 0  }
   0x2   :  { %s905_s23 = smov 0   ;;  %s907_s24 = smov 0  }
   0x3 LB: > { %s922_s25 = sadd.s32 4294967295, %s860_s24   ;;  %s647_s26 = sadd.s32 4294967294, %s860_s24   ;;  %s860_s24 = sphi %s907_s24, %s1095_s24   ;;  %s856_s23 = sphi %s905_s23, %s1094_s23   ;;  %s852_s22 = sphi %s903_s22, %s1093_s22   ;;  %s848_s21 = sphi %s901_s21, %s1092_s21  }
   0x4   : > { %s926_s27 = sadd.s32 1, %s860_s24   ;;  %s157_s28 = sadd.s32 1, %s856_s23 }
   0x5   : > { %s154_s29 = ssub.s32 %s860_s24, %s926_s27  ;;  %p167_p0 = scmp.ne.s32.totalorder %s856_s23, %s852_s22 }
   0x6   : > { %p155_p1 = scmp.eq.s32.totalorder %s154_s29, 0  ;;  %p168_p2 = scmp.eq.s32.totalorder %s922_s25, 1 }
   0x7   : > { %p173_p3 = scmp.ne.s32.totalorder %s852_s22, %s848_s21  ;;  %p174_p4 = scmp.eq.s32.totalorder %s647_s26, 1 }
   0x8   : > { %s937_s30 = scalar_select %p155_p1, %s856_s23, %s157_s28  }
   0x9   : > { %p939_p5 = por %p168_p2, %p167_p0  ;;  %p943_p6 = por %p174_p4, %p173_p3 }
   0xa   : > { %p650_p7 = scmp.ge.s32.totalorder %s860_s24, 1  ;;  %p214_p8 = scmp.lt.s32.totalorder %s860_s24, 3 }
   0xc   : > { %p215_p9 = pnand %p650_p7, %p214_p8 }
   0xd   : > { %v248_v0 = vld [vmem:[%s1084_s1] sm:$0xff] (!%p215_p9)  ;;  %v249_v1 = vld [vmem:[%s1084_s1 + $0x8] sm:$0xff] (!%p215_p9)  ;;  %v250_v2 = vld [vmem:[%s1084_s1 + $0x10] sm:$0xff] (!%p215_p9)  ;;  %v862_v3 = vmov (!%p215_p9), 0.0|0.0   ;;  %vm863_vm0 = vmmov (!%p215_p9), 0   ;;  %v864_v6 = vmov (!%p215_p9), 0.0  }
   0xe   : > { %218 = sbr.rel (%p215_p9) target bundleno = 1087 (0x43f), region = 44  ;;  %723 = vmatprep.subr.bf16.mxu0 (!%p215_p9), %v862_v3  ;;  %v724_v4 = vpack.c.bf16 (!%p215_p9), %v249_v1, %v248_v0  ;;  %v251_v5 = vld [vmem:[%s1084_s1 + $0x18] sm:$0xff] (!%p215_p9)  ;;  %698 = vmatprep.mubr.msk.f32.mxu0 (!%p215_p9), %vm863_vm0, %v864_v6  ;;  %p243_p10 = scmp.lt.s32.totalorder (!%p215_p9), %s922_s25, 1  ;;  %v252_v8 = vld [vmem:[%s1084_s1 + $0x20] sm:$0xff] (!%p215_p9)  ;;  %v253_v9 = vld [vmem:[%s1084_s1 + $0x28] sm:$0xff] (!%p215_p9)  ;;  %vm261_vm1 = vcmask (!%p215_p9), 392192  }
   0xf   : > { %732 = vmatprep.subr.bf16.mxu1 (!%p215_p9), %v862_v3  ;;  %709 = vmatprep.mubr.msk.f32.mxu1 (!%p215_p9), %vm863_vm0, %v864_v6  ;;  %v727_v7 = vpack.c.bf16 (!%p215_p9), %v251_v5, %v250_v2  ;;  %v730_v10 = vpack.c.bf16 (!%p215_p9), %v253_v9, %v252_v8  ;;  %v653_v12 = vld [vmem:[%s1086_s3] ss:$0 sm:$0xff] (!%p215_p9)  ;;  %vm335_vm2 = vcmask (!%p215_p9), 261120   ;;  %v372_v20 = vld [vmem:[%s1085_s2 + $0x8] sm:$0xff] (!%p215_p9)  ;;  %v373_v21 = vld [vmem:[%s1085_s2 + $0x10] sm:$0xff] (!%p215_p9)  ;;  %s240_s9 = sand.u32 (!%p215_p9), 1, %s852_s22  }
  0x10   : > { %725 = vmatpush3.bf16.msra.mxu0 (!%p215_p9), %v724_v4  ;;  %v371_v19 = vld [vmem:[%s1085_s2] sm:$0xff] (!%p215_p9)  ;;  %v374_v23 = vld [vmem:[%s1085_s2 + $0x18] sm:$0xff] (!%p215_p9)  ;;  %v490_v54 = vld [vmem:[%s1087_s4 + $0x8] sm:$0xff] (!%p215_p9)  ;;  %s666_s13 = sshll.u32 (!%p215_p9), %s922_s25, 7  ;;  %s575_s19 = scalar_lea.sflag (!%p215_p9), [#allocation3], %s240_s9 }
  0x11   : > { %726 = vmatprep.subr.bf16.mxu0 (!%p215_p9), %v862_v3  ;;  %v733_v22 = vpack.c.bf16 (!%p215_p9), %v372_v20, %v371_v19  ;;  %v736_v24 = vpack.c.bf16 (!%p215_p9), %v374_v23, %v373_v21  ;;  %v655_v33 = vld [vmem:[%s1086_s3 + $0x1] ss:$0 sm:$0xff] (!%p215_p9)  ;;  %v656_v36 = vld [vmem:[%s1086_s3 + $0x2] ss:$0 sm:$0xff] (!%p215_p9)  ;;  %v658_v46 = vld [vmem:[%s1086_s3 + $0x3] ss:$0 sm:$0xff] (!%p215_p9)  ;;  %s1041_s18 = scalar_lea.hbm (!%p215_p9), %s1089_s6, %s666_s13 }
  0x12   : > { %v489_v53 = vld [vmem:[%s1087_s4] sm:$0xff] (!%p215_p9)  ;;  %v491_v55 = vld [vmem:[%s1087_s4 + $0x10] sm:$0xff] (!%p215_p9)  ;;  %v492_v57 = vld [vmem:[%s1087_s4 + $0x18] sm:$0xff] (!%p215_p9) }
  0x13   : > { %734 = vmatpush3.bf16.msra.mxu1 (!%p215_p9), %v733_v22  ;;  %v739_v56 = vpack.c.bf16 (!%p215_p9), %v490_v54, %v489_v53  ;;  %v742_v58 = vpack.c.bf16 (!%p215_p9), %v492_v57, %v491_v55  ;;  %v660_v4 = vld [vmem:[%s1086_s3 + $0x4] ss:$0 sm:$0xff] (!%p215_p9) }
  0x14   : > { %728 = vmatpush3.bf16.msra.mxu0 (!%p215_p9), %v727_v7  ;;  %735 = vmatprep.subr.bf16.mxu1 (!%p215_p9), %v862_v3 }
  0x15   : > { %s244_s17 = scalar_select %p243_p10, %s922_s25, 1  ;;  %729 = vmatprep.subr.bf16.mxu0 %v862_v3 }
  0x16   : > { %s865_s25 = smov [#allocation2]  }
  0x17   : > { %s652_s28 = sshll.u32 %s244_s17, 3  ;;  %737 = vmatpush3.bf16.msra.mxu1 %v736_v24  ;;  %s802_s26 = sshll.u32 %s865_s25, 4  ;;  %s803_s26 = int_to_ptr.vmem [resolvable:$false] %s802_s26 }
  0x18   : > { %s246_s10 = scalar_lea.vmem %s1083_s0, %s652_s28  ;;  %731 = vmatpush3.bf16.msra.mxu0 %v730_v10  ;;  %738 = vmatprep.subr.bf16.mxu1 %v862_v3  ;;  %s804_s28 = scalar_lea.vmem %s803_s26, 256 }
  0x19   : > { %v247_v11 = vld [vmem:[%s246_s10] sm:$0xff]  ;;  %s651_s10 = sshll.u32 %s240_s9, 3 }
  0x1a   : > { %s242_s14 = scalar_lea.vmem [#allocation2], %s651_s10 }
  0x1b   : > { %699 = vmatmul.mubr.msk.f32.vlgmr.msra.gmra.mrb[0].mxu0 %vm261_vm1, %v247_v11  ;;  %s588_s15 = sshll.u32 %s242_s14, 4  ;;  %s1043_s15 = int_to_ptr.vmem [resolvable:$true] %s588_s15 }
  0x1c   : > { %s798_s20 = scalar_lea.vmem %s1043_s15, 128  ;;  %p805_p0 = scmp.lt.s32.totalorder %s1043_s15, %s803_s26 }
  0x1d   : > { %p799_p11 = scmp.ne.s32.totalorder %s1043_s15, %s798_s20  ;;  %p806_p1 = scmp.lt.s32.totalorder %s804_s28, %s798_s20 }
  0x1f   : > { %p800_p12 = pnand %p799_p11, %p939_p5  ;;  %p807_p2 = por %p806_p1, %p805_p0 }
  0x21   : > { %p801_p13 = pneg %p800_p12 }
  0x23   : > { %p808_p3 = pnand %p807_p2, %p801_p13 }
  0xee   : > { %v331_v13 = vpop.f32.mrb[0].mxu0 }
  0xef   : > { %v332_v14 = vadd.f32 %v653_v12, %v331_v13  ;;  %v700_v15 = vpop.f32.mrb[1].mxu0 }
  0xf1   : > { %v336_v16 = vsel %vm335_vm2, %v332_v14, 0.0  ;;  %v341_v17 = vmul.f32 %v332_v14, %v332_v14 }
  0xf2   : > { %337 = vadd.xlane.f32.xlu0 %v336_v16  ;;  %v663_v16 = vld [vmem:[%s1088_s5] ss:$0 sm:$0xff] }
  0xf3   : > { %v342_v18 = vsel %vm335_vm2, %v341_v17, 0.0 }
  0xf6   : > { %343 = vadd.xlane.f32.xlu0 %v342_v18 }
 0x17f   : > { %v338_v25 = vpop.xlane.xlu0 %337 }
 0x180   : > { %v340_v26 = vmul.f32 0.03125, %v338_v25 }
 0x182   : > { %v346_v28 = vmul.f32 %v340_v26, %v340_v26 }
 0x183   : > { %v344_v27 = vpop.xlane.xlu0 %343 }
 0x184   : > { %v345_v29 = vmul.f32 0.03125, %v344_v27 }
 0x186   : > { %v347_v30 = vsub.f32 %v345_v29, %v346_v28 }
 0x188   : > { %v348_v31 = vmax.f32 %v347_v30, 0.0 }
 0x18a   : > { %v349_v32 = vadd.f32 1e-05, %v348_v31 }
 0x18c   : > { %786 = vrsqrt.f32 %v349_v32 }
 0x196   : > { %v787_v34 = vpop.eup %786 }
 0x197   : > { %v355_v35 = vmul.f32 %v787_v34, %v655_v33 }
 0x199   : > { %v357_v37 = vmul.f32 %v355_v35, %v340_v26  ;;  %v356_v38 = vmul.f32 %v355_v35, %v332_v14 }
 0x19b   : > { %v362_v39 = vsub.f32 %v656_v36, %v357_v37 }
 0x19d   : > { %v363_v40 = vadd.f32 %v362_v39, %v356_v38 }
 0x19f   : > { %v657_v41 = vmul.f32 -1.442695, %v363_v40 }
 0x1a1   : > { %788 = vpow2.f32 %v657_v41 }
 0x1ab   : > { %v789_v42 = vpop.eup %788 }
 0x1ac   : > { %v367_v43 = vadd.f32 1.0, %v789_v42 }
 0x1ae   : > { %790 = vrcp.f32 %v367_v43 }
 0x1b8   : > { %v791_v44 = vpop.eup %790 }
 0x1b9   : > { %v370_v45 = vmul.f32 %v791_v44, %v363_v40 }
 0x1bb   : > { %710 = vmatmul.mubr.msk.f32.vlgmr.msra.gmra.mrb[0].mxu1 %vm335_vm2, %v370_v45 }
 0x1bc   : > { %720 = vmatprep.mubr.msk.f32.mxu1 %vm863_vm0, %v864_v6  ;;  %740 = vmatpush3.bf16.msra.mxu1 %v739_v56 }
 0x1bd   : > { %741 = vmatprep.subr.bf16.mxu1 %v862_v3  ;;  %v661_v3 = vld [vmem:[%s1086_s3 + $0x5] ss:$0 sm:$0xff] }
 0x1c0   : > { %743 = vmatpush3.bf16.msra.mxu1 %v742_v58 }
 0x28e   : > { %v451_v47 = vpop.f32.mrb[0].mxu1 }
 0x28f   : > { %v452_v48 = vadd.f32 %v658_v46, %v451_v47  ;;  %v711_v49 = vpop.f32.mrb[1].mxu1 }
 0x291   : > { %v455_v50 = vsel %vm335_vm2, %v452_v48, 0.0  ;;  %v459_v51 = vmul.f32 %v452_v48, %v452_v48 }
 0x292   : > { %456 = vadd.xlane.f32.xlu1 %v455_v50 }
 0x293   : > { %v460_v52 = vsel %vm335_vm2, %v459_v51, 0.0 }
 0x296   : > { %461 = vadd.xlane.f32.xlu1 %v460_v52 }
 0x31f   : > { %v457_v59 = vpop.xlane.xlu1 %456 }
 0x320   : > { %v458_v60 = vmul.f32 0.03125, %v457_v59 }
 0x322   : > { %v464_v62 = vmul.f32 %v458_v60, %v458_v60 }
 0x323   : > { %v462_v61 = vpop.xlane.xlu1 %461 }
 0x324   : > { %v463_v63 = vmul.f32 0.03125, %v462_v61 }
 0x326   : > { %v465_v0 = vsub.f32 %v463_v63, %v464_v62 }
 0x328   : > { %v466_v1 = vmax.f32 %v465_v0, 0.0 }
 0x32a   : > { %v467_v2 = vadd.f32 1e-05, %v466_v1 }
 0x32c   : > { %792 = vrsqrt.f32 %v467_v2 }
 0x336   : > { %v793_v5 = vpop.eup %792 }
 0x337   : > { %v473_v6 = vmul.f32 %v793_v5, %v660_v4 }
 0x339   : > { %v475_v7 = vmul.f32 %v473_v6, %v458_v60  ;;  %v474_v8 = vmul.f32 %v473_v6, %v452_v48 }
 0x33b   : > { %v480_v9 = vsub.f32 %v661_v3, %v475_v7 }
 0x33d   : > { %v481_v10 = vadd.f32 %v480_v9, %v474_v8 }
 0x33f   : > { %v662_v11 = vmul.f32 -1.442695, %v481_v10 }
 0x341   : > { %794 = vpow2.f32 %v662_v11 }
 0x34b   : > { %v795_v12 = vpop.eup %794 }
 0x34c   : > { %v485_v13 = vadd.f32 1.0, %v795_v12 }
 0x34e   : > { %796 = vrcp.f32 %v485_v13 }
 0x358   : > { %v797_v14 = vpop.eup %796 }
 0x359   : > { %v488_v15 = vmul.f32 %v797_v14, %v481_v10 }
 0x35b   : > { %721 = vmatmul.mubr.msk.f32.vlgmr.msra.gmra.mrb[2].mxu1 %vm335_vm2, %v488_v15 }
 0x42e   : > { %v569_v17 = vpop.f32.mrb[2].mxu1 }
 0x42f   : > { %v570_v18 = vadd.f32 %v663_v16, %v569_v17  ;;  %v722_v19 = vpop.f32.mrb[3].mxu1 }
 0x431   : > { %573 = vst [vmem:[%s242_s14] sm:$0xff] %v570_v18 }
 0x432   : > { %811 = shalt.err (!%p808_p3)
}
 0x433   : > { %s812_s29 = scalar_lea.hbm %s1041_s18, 128  ;;  %s816_s11 = scalar_lea.hbm %s1089_s6, 256 }
 0x434   : > { %p813_p4 = scmp.ne.s32.totalorder %s1041_s18, %s812_s29  ;;  %p817_p9 = scmp.lt.u32.totalorder %s1041_s18, %s1089_s6 }
 0x435   : > { %p818_p10 = scmp.lt.u32.totalorder %s816_s11, %s812_s29  ;;  %p820_p12 = scmp.lt.u32.totalorder %s812_s29, %s1041_s18 }
 0x436   : > { %p814_p7 = pnand %p813_p4, %p939_p5 }
 0x437   : > { %p819_p11 = por %p818_p10, %p817_p9 }
 0x438   : > { %p815_p8 = pneg %p814_p7 }
 0x439   : > { %p821_p13 = por %p820_p12, %p819_p11 }
 0x43b   : > { %p822_p0 = pnand %p821_p13, %p815_p8 }
 0x43d   : > { %825 = shalt.err (!%p822_p0)
}
 0x43e   : > { %744 = dma.vmem_to_hbm [thread:$0]  (%p939_p5), %s1043_s15, 128, %s1041_s18, %s575_s19  }
 0x43f PF: > { %p750_p1 = scmp.ge.s32.totalorder %s860_s24, 2  ;;  %s600_s14 = sand.u32 1, %s848_s21  }
 0x440   : > { %s601_s16 = scalar_lea.sflag [#allocation3], %s600_s14 }
 0x441   : > { %p747_p2 = pnand %p750_p1, %p943_p6 }
 0x443   : > { %843 = dma.done.wait (!%p747_p2), %s601_s16, 128  }
 0x444   : > { %845 = vsyncadd (!%p747_p2), %s601_s16, 4294967168  ;;  %p16_p3 = scmp.ge.s32.totalorder %s926_s27, 4   ;;  %s1092_s21 = smov %s852_s22 }
 0x445   : > { %s1093_s22 = smov %s856_s23  ;;  %s1094_s23 = smov %s937_s30 }
 0x446   : > { %s1095_s24 = smov %s926_s27  ;;  %18 = sbr.rel (!%p16_p3) target bundleno = 3 (0x3), region = 79 }
 0x44d   :  { %606 = vsyncpa [#allocation3], 1 }
 0x44e   :  { %608 = vsyncpa [#allocation3 + $0x1], 1 }

// kernel: tpu_custom_call.1
= control target key start
LH: loop header
LB: loop body
LE: loop exit
PB: predicated region body
PF: predicated region fallthrough
CT: control target
= control target key end

     0   :  { %11 = vsyncpa [#allocation3], 0  ;;  %s1083_s0 = inlined_call_operand.vmem [shape: f32[16,48], index: 0, kind: input, shape index: {}]   ;;  %s1084_s1 = inlined_call_operand.vmem [shape: f32[48,32], index: 1, kind: input, shape index: {}]   ;;  %s1085_s2 = inlined_call_operand.vmem [shape: f32[1,32,32], index: 2, kind: input, shape index: {}]   ;;  %s1086_s3 = inlined_call_operand.vmem [shape: f32[6,32], index: 3, kind: input, shape index: {}]   ;;  %s1087_s4 = inlined_call_operand.vmem [shape: f32[32,128], index: 4, kind: input, shape index: {}]   ;;  %s1088_s5 = inlined_call_operand.vmem [shape: f32[1,128], index: 5, kind: input, shape index: {}]   ;;  %s1089_s6 = inlined_call_operand.hbm [shape: f32[16,128], index: 6, kind: output, shape index: {}]  }
   0x1   :  { %13 = vsyncpa [#allocation3 + $0x1], 0  ;;  %s901_s21 = smov 0   ;;  %s903_s22 = smov 0  }
   0x2   :  { %s905_s23 = smov 0   ;;  %s907_s24 = smov 0  }
   0x3 LB: > { %s922_s25 = sadd.s32 4294967295, %s860_s24   ;;  %s647_s26 = sadd.s32 4294967294, %s860_s24   ;;  %s860_s24 = sphi %s907_s24, %s1095_s24   ;;  %s856_s23 = sphi %s905_s23, %s1094_s23   ;;  %s852_s22 = sphi %s903_s22, %s1093_s22   ;;  %s848_s21 = sphi %s901_s21, %s1092_s21  }
   0x4   : > { %s926_s27 = sadd.s32 1, %s860_s24   ;;  %s157_s28 = sadd.s32 1, %s856_s23 }
   0x5   : > { %s154_s29 = ssub.s32 %s860_s24, %s926_s27  ;;  %p167_p0 = scmp.ne.s32.totalorder %s856_s23, %s852_s22 }
   0x6   : > { %p155_p1 = scmp.eq.s32.totalorder %s154_s29, 0  ;;  %p168_p2 = scmp.eq.s32.totalorder %s922_s25, 1 }
   0x7   : > { %p173_p3 = scmp.ne.s32.totalorder %s852_s22, %s848_s21  ;;  %p174_p4 = scmp.eq.s32.totalorder %s647_s26, 1 }
   0x8   : > { %s937_s30 = scalar_select %p155_p1, %s856_s23, %s157_s28  }
   0x9   : > { %p939_p5 = por %p168_p2, %p167_p0  ;;  %p943_p6 = por %p174_p4, %p173_p3 }
   0xa   : > { %p650_p7 = scmp.ge.s32.totalorder %s860_s24, 1  ;;  %p214_p8 = scmp.lt.s32.totalorder %s860_s24, 3 }
   0xc   : > { %p215_p9 = pnand %p650_p7, %p214_p8 }
   0xd   : > { %v248_v0 = vld [vmem:[%s1084_s1] sm:$0xff] (!%p215_p9)  ;;  %v249_v1 = vld [vmem:[%s1084_s1 + $0x8] sm:$0xff] (!%p215_p9)  ;;  %v250_v2 = vld [vmem:[%s1084_s1 + $0x10] sm:$0xff] (!%p215_p9)  ;;  %v862_v3 = vmov (!%p215_p9), 0.0|0.0   ;;  %vm863_vm0 = vmmov (!%p215_p9), 0   ;;  %v864_v6 = vmov (!%p215_p9), 0.0  }
   0xe   : > { %218 = sbr.rel (%p215_p9) target bundleno = 1087 (0x43f), region = 44  ;;  %723 = vmatprep.subr.bf16.mxu0 (!%p215_p9), %v862_v3  ;;  %v724_v4 = vpack.c.bf16 (!%p215_p9), %v249_v1, %v248_v0  ;;  %v251_v5 = vld [vmem:[%s1084_s1 + $0x18] sm:$0xff] (!%p215_p9)  ;;  %698 = vmatprep.mubr.msk.f32.mxu0 (!%p215_p9), %vm863_vm0, %v864_v6  ;;  %p243_p10 = scmp.lt.s32.totalorder (!%p215_p9), %s922_s25, 1  ;;  %v252_v8 = vld [vmem:[%s1084_s1 + $0x20] sm:$0xff] (!%p215_p9)  ;;  %v253_v9 = vld [vmem:[%s1084_s1 + $0x28] sm:$0xff] (!%p215_p9)  ;;  %vm261_vm1 = vcmask (!%p215_p9), 392192  }
   0xf   : > { %732 = vmatprep.subr.bf16.mxu1 (!%p215_p9), %v862_v3  ;;  %709 = vmatprep.mubr.msk.f32.mxu1 (!%p215_p9), %vm863_vm0, %v864_v6  ;;  %v727_v7 = vpack.c.bf16 (!%p215_p9), %v251_v5, %v250_v2  ;;  %v730_v10 = vpack.c.bf16 (!%p215_p9), %v253_v9, %v252_v8  ;;  %v653_v12 = vld [vmem:[%s1086_s3] ss:$0 sm:$0xff] (!%p215_p9)  ;;  %vm335_vm2 = vcmask (!%p215_p9), 261120   ;;  %v372_v20 = vld [vmem:[%s1085_s2 + $0x8] sm:$0xff] (!%p215_p9)  ;;  %v373_v21 = vld [vmem:[%s1085_s2 + $0x10] sm:$0xff] (!%p215_p9)  ;;  %s240_s9 = sand.u32 (!%p215_p9), 1, %s852_s22  }
  0x10   : > { %725 = vmatpush3.bf16.msra.mxu0 (!%p215_p9), %v724_v4  ;;  %v371_v19 = vld [vmem:[%s1085_s2] sm:$0xff] (!%p215_p9)  ;;  %v374_v23 = vld [vmem:[%s1085_s2 + $0x18] sm:$0xff] (!%p215_p9)  ;;  %v490_v54 = vld [vmem:[%s1087_s4 + $0x8] sm:$0xff] (!%p215_p9)  ;;  %s666_s13 = sshll.u32 (!%p215_p9), %s922_s25, 7  ;;  %s575_s19 = scalar_lea.sflag (!%p215_p9), [#allocation3], %s240_s9 }
  0x11   : > { %726 = vmatprep.subr.bf16.mxu0 (!%p215_p9), %v862_v3  ;;  %v733_v22 = vpack.c.bf16 (!%p215_p9), %v372_v20, %v371_v19  ;;  %v736_v24 = vpack.c.bf16 (!%p215_p9), %v374_v23, %v373_v21  ;;  %v655_v33 = vld [vmem:[%s1086_s3 + $0x1] ss:$0 sm:$0xff] (!%p215_p9)  ;;  %v656_v36 = vld [vmem:[%s1086_s3 + $0x2] ss:$0 sm:$0xff] (!%p215_p9)  ;;  %v658_v46 = vld [vmem:[%s1086_s3 + $0x3] ss:$0 sm:$0xff] (!%p215_p9)  ;;  %s1041_s18 = scalar_lea.hbm (!%p215_p9), %s1089_s6, %s666_s13 }
  0x12   : > { %v489_v53 = vld [vmem:[%s1087_s4] sm:$0xff] (!%p215_p9)  ;;  %v491_v55 = vld [vmem:[%s1087_s4 + $0x10] sm:$0xff] (!%p215_p9)  ;;  %v492_v57 = vld [vmem:[%s1087_s4 + $0x18] sm:$0xff] (!%p215_p9) }
  0x13   : > { %734 = vmatpush3.bf16.msra.mxu1 (!%p215_p9), %v733_v22  ;;  %v739_v56 = vpack.c.bf16 (!%p215_p9), %v490_v54, %v489_v53  ;;  %v742_v58 = vpack.c.bf16 (!%p215_p9), %v492_v57, %v491_v55  ;;  %v660_v4 = vld [vmem:[%s1086_s3 + $0x4] ss:$0 sm:$0xff] (!%p215_p9) }
  0x14   : > { %728 = vmatpush3.bf16.msra.mxu0 (!%p215_p9), %v727_v7  ;;  %735 = vmatprep.subr.bf16.mxu1 (!%p215_p9), %v862_v3 }
  0x15   : > { %s244_s17 = scalar_select %p243_p10, %s922_s25, 1  ;;  %729 = vmatprep.subr.bf16.mxu0 %v862_v3 }
  0x16   : > { %s865_s25 = smov [#allocation2]  }
  0x17   : > { %s652_s28 = sshll.u32 %s244_s17, 3  ;;  %737 = vmatpush3.bf16.msra.mxu1 %v736_v24  ;;  %s802_s26 = sshll.u32 %s865_s25, 4  ;;  %s803_s26 = int_to_ptr.vmem [resolvable:$false] %s802_s26 }
  0x18   : > { %s246_s10 = scalar_lea.vmem %s1083_s0, %s652_s28  ;;  %731 = vmatpush3.bf16.msra.mxu0 %v730_v10  ;;  %738 = vmatprep.subr.bf16.mxu1 %v862_v3  ;;  %s804_s28 = scalar_lea.vmem %s803_s26, 256 }
  0x19   : > { %v247_v11 = vld [vmem:[%s246_s10] sm:$0xff]  ;;  %s651_s10 = sshll.u32 %s240_s9, 3 }
  0x1a   : > { %s242_s14 = scalar_lea.vmem [#allocation2], %s651_s10 }
  0x1b   : > { %699 = vmatmul.mubr.msk.f32.vlgmr.msra.gmra.mrb[0].mxu0 %vm261_vm1, %v247_v11  ;;  %s588_s15 = sshll.u32 %s242_s14, 4  ;;  %s1043_s15 = int_to_ptr.vmem [resolvable:$true] %s588_s15 }
  0x1c   : > { %s798_s20 = scalar_lea.vmem %s1043_s15, 128  ;;  %p805_p0 = scmp.lt.s32.totalorder %s1043_s15, %s803_s26 }
  0x1d   : > { %p799_p11 = scmp.ne.s32.totalorder %s1043_s15, %s798_s20  ;;  %p806_p1 = scmp.lt.s32.totalorder %s804_s28, %s798_s20 }
  0x1f   : > { %p800_p12 = pnand %p799_p11, %p939_p5  ;;  %p807_p2 = por %p806_p1, %p805_p0 }
  0x21   : > { %p801_p13 = pneg %p800_p12 }
  0x23   : > { %p808_p3 = pnand %p807_p2, %p801_p13 }
  0xee   : > { %v331_v13 = vpop.f32.mrb[0].mxu0 }
  0xef   : > { %v332_v14 = vadd.f32 %v653_v12, %v331_v13  ;;  %v700_v15 = vpop.f32.mrb[1].mxu0 }
  0xf1   : > { %v336_v16 = vsel %vm335_vm2, %v332_v14, 0.0  ;;  %v341_v17 = vmul.f32 %v332_v14, %v332_v14 }
  0xf2   : > { %337 = vadd.xlane.f32.xlu0 %v336_v16  ;;  %v663_v16 = vld [vmem:[%s1088_s5] ss:$0 sm:$0xff] }
  0xf3   : > { %v342_v18 = vsel %vm335_vm2, %v341_v17, 0.0 }
  0xf6   : > { %343 = vadd.xlane.f32.xlu0 %v342_v18 }
 0x17f   : > { %v338_v25 = vpop.xlane.xlu0 %337 }
 0x180   : > { %v340_v26 = vmul.f32 0.03125, %v338_v25 }
 0x182   : > { %v346_v28 = vmul.f32 %v340_v26, %v340_v26 }
 0x183   : > { %v344_v27 = vpop.xlane.xlu0 %343 }
 0x184   : > { %v345_v29 = vmul.f32 0.03125, %v344_v27 }
 0x186   : > { %v347_v30 = vsub.f32 %v345_v29, %v346_v28 }
 0x188   : > { %v348_v31 = vmax.f32 %v347_v30, 0.0 }
 0x18a   : > { %v349_v32 = vadd.f32 1e-05, %v348_v31 }
 0x18c   : > { %786 = vrsqrt.f32 %v349_v32 }
 0x196   : > { %v787_v34 = vpop.eup %786 }
 0x197   : > { %v355_v35 = vmul.f32 %v787_v34, %v655_v33 }
 0x199   : > { %v357_v37 = vmul.f32 %v355_v35, %v340_v26  ;;  %v356_v38 = vmul.f32 %v355_v35, %v332_v14 }
 0x19b   : > { %v362_v39 = vsub.f32 %v656_v36, %v357_v37 }
 0x19d   : > { %v363_v40 = vadd.f32 %v362_v39, %v356_v38 }
 0x19f   : > { %v657_v41 = vmul.f32 -1.442695, %v363_v40 }
 0x1a1   : > { %788 = vpow2.f32 %v657_v41 }
 0x1ab   : > { %v789_v42 = vpop.eup %788 }
 0x1ac   : > { %v367_v43 = vadd.f32 1.0, %v789_v42 }
 0x1ae   : > { %790 = vrcp.f32 %v367_v43 }
 0x1b8   : > { %v791_v44 = vpop.eup %790 }
 0x1b9   : > { %v370_v45 = vmul.f32 %v791_v44, %v363_v40 }
 0x1bb   : > { %710 = vmatmul.mubr.msk.f32.vlgmr.msra.gmra.mrb[0].mxu1 %vm335_vm2, %v370_v45 }
 0x1bc   : > { %720 = vmatprep.mubr.msk.f32.mxu1 %vm863_vm0, %v864_v6  ;;  %740 = vmatpush3.bf16.msra.mxu1 %v739_v56 }
 0x1bd   : > { %741 = vmatprep.subr.bf16.mxu1 %v862_v3  ;;  %v661_v3 = vld [vmem:[%s1086_s3 + $0x5] ss:$0 sm:$0xff] }
 0x1c0   : > { %743 = vmatpush3.bf16.msra.mxu1 %v742_v58 }
 0x28e   : > { %v451_v47 = vpop.f32.mrb[0].mxu1 }
 0x28f   : > { %v452_v48 = vadd.f32 %v658_v46, %v451_v47  ;;  %v711_v49 = vpop.f32.mrb[1].mxu1 }
 0x291   : > { %v455_v50 = vsel %vm335_vm2, %v452_v48, 0.0  ;;  %v459_v51 = vmul.f32 %v452_v48, %v452_v48 }
 0x292   : > { %456 = vadd.xlane.f32.xlu1 %v455_v50 }
 0x293   : > { %v460_v52 = vsel %vm335_vm2, %v459_v51, 0.0 }
 0x296   : > { %461 = vadd.xlane.f32.xlu1 %v460_v52 }
 0x31f   : > { %v457_v59 = vpop.xlane.xlu1 %456 }
 0x320   : > { %v458_v60 = vmul.f32 0.03125, %v457_v59 }
 0x322   : > { %v464_v62 = vmul.f32 %v458_v60, %v458_v60 }
 0x323   : > { %v462_v61 = vpop.xlane.xlu1 %461 }
 0x324   : > { %v463_v63 = vmul.f32 0.03125, %v462_v61 }
 0x326   : > { %v465_v0 = vsub.f32 %v463_v63, %v464_v62 }
 0x328   : > { %v466_v1 = vmax.f32 %v465_v0, 0.0 }
 0x32a   : > { %v467_v2 = vadd.f32 1e-05, %v466_v1 }
 0x32c   : > { %792 = vrsqrt.f32 %v467_v2 }
 0x336   : > { %v793_v5 = vpop.eup %792 }
 0x337   : > { %v473_v6 = vmul.f32 %v793_v5, %v660_v4 }
 0x339   : > { %v475_v7 = vmul.f32 %v473_v6, %v458_v60  ;;  %v474_v8 = vmul.f32 %v473_v6, %v452_v48 }
 0x33b   : > { %v480_v9 = vsub.f32 %v661_v3, %v475_v7 }
 0x33d   : > { %v481_v10 = vadd.f32 %v480_v9, %v474_v8 }
 0x33f   : > { %v662_v11 = vmul.f32 -1.442695, %v481_v10 }
 0x341   : > { %794 = vpow2.f32 %v662_v11 }
 0x34b   : > { %v795_v12 = vpop.eup %794 }
 0x34c   : > { %v485_v13 = vadd.f32 1.0, %v795_v12 }
 0x34e   : > { %796 = vrcp.f32 %v485_v13 }
 0x358   : > { %v797_v14 = vpop.eup %796 }
 0x359   : > { %v488_v15 = vmul.f32 %v797_v14, %v481_v10 }
 0x35b   : > { %721 = vmatmul.mubr.msk.f32.vlgmr.msra.gmra.mrb[2].mxu1 %vm335_vm2, %v488_v15 }
 0x42e   : > { %v569_v17 = vpop.f32.mrb[2].mxu1 }
 0x42f   : > { %v570_v18 = vadd.f32 %v663_v16, %v569_v17  ;;  %v722_v19 = vpop.f32.mrb[3].mxu1 }
 0x431   : > { %573 = vst [vmem:[%s242_s14] sm:$0xff] %v570_v18 }
 0x432   : > { %811 = shalt.err (!%p808_p3)
}
 0x433   : > { %s812_s29 = scalar_lea.hbm %s1041_s18, 128  ;;  %s816_s11 = scalar_lea.hbm %s1089_s6, 256 }
 0x434   : > { %p813_p4 = scmp.ne.s32.totalorder %s1041_s18, %s812_s29  ;;  %p817_p9 = scmp.lt.u32.totalorder %s1041_s18, %s1089_s6 }
 0x435   : > { %p818_p10 = scmp.lt.u32.totalorder %s816_s11, %s812_s29  ;;  %p820_p12 = scmp.lt.u32.totalorder %s812_s29, %s1041_s18 }
 0x436   : > { %p814_p7 = pnand %p813_p4, %p939_p5 }
 0x437   : > { %p819_p11 = por %p818_p10, %p817_p9 }
 0x438   : > { %p815_p8 = pneg %p814_p7 }
 0x439   : > { %p821_p13 = por %p820_p12, %p819_p11 }
 0x43b   : > { %p822_p0 = pnand %p821_p13, %p815_p8 }
 0x43d   : > { %825 = shalt.err (!%p822_p0)
}
 0x43e   : > { %744 = dma.vmem_to_hbm [thread:$0]  (%p939_p5), %s1043_s15, 128, %s1041_s18, %s575_s19  }
 0x43f PF: > { %p750_p1 = scmp.ge.s32.totalorder %s860_s24, 2  ;;  %s600_s14 = sand.u32 1, %s848_s21  }
 0x440   : > { %s601_s16 = scalar_lea.sflag [#allocation3], %s600_s14 }
 0x441   : > { %p747_p2 = pnand %p750_p1, %p943_p6 }
 0x443   : > { %843 = dma.done.wait (!%p747_p2), %s601_s16, 128  }
 0x444   : > { %845 = vsyncadd (!%p747_p2), %s601_s16, 4294967168  ;;  %p16_p3 = scmp.ge.s32.totalorder %s926_s27, 4   ;;  %s1092_s21 = smov %s852_s22 }
 0x445   : > { %s1093_s22 = smov %s856_s23  ;;  %s1094_s23 = smov %s937_s30 }
 0x446   : > { %s1095_s24 = smov %s926_s27  ;;  %18 = sbr.rel (!%p16_p3) target bundleno = 3 (0x3), region = 79 }
 0x44d   :  { %606 = vsyncpa [#allocation3], 1 }
 0x44e   :  { %608 = vsyncpa [#allocation3 + $0x1], 1 }

</bundles_post_ra>
